<compile_context>
chip_gen: v7x
topology: tpu7x:2x2x1
jax: 0.10.0
libtpu: 0.0.40
codegen_flags: <defaults>
</compile_context>

<pallas_src>
import functools

import jax
import jax.numpy as jnp
from jax import lax
from jax.experimental import pallas as pl
from jax.experimental.pallas import tpu as pltpu

KSIZE = 7            # SpatialAttention kernel_size=7
PAD = 3              # padding for kernel_size == 7
LEAKY_SLOPE = 0.01   # PyTorch nn.LeakyReLU() default negative_slope


@functools.lru_cache(maxsize=None)
def _roll_matches_numpy():
    """pltpu.roll is documented to follow np.roll (out[i] = x[(i - shift) % n]).
    Probe the convention once on-device so the conv tap offsets stay correct
    regardless of the rotate direction of the underlying lowering."""
    def probe(x_ref, o_ref):
        o_ref[...] = pltpu.roll(x_ref[...], shift=1, axis=1)

    x = jnp.tile(jnp.arange(128, dtype=jnp.float32)[None, :], (8, 1))
    y = pl.pallas_call(
        probe, out_shape=jax.ShapeDtypeStruct((8, 128), jnp.float32)
    )(x)
    return bool(y[0, 1] == x[0, 0])


def _conv_weight_mask_table(w_conv, H, W):
    """(49, 2, H*W) table: entry [ky*7+kx, c, p] holds w_conv[0, c, ky, kx]
    wherever tap (ky-3, kx-3) lands inside the image for output pixel p and 0
    elsewhere (folds the conv's zero padding into the weights)."""
    HW = H * W
    pos = jnp.arange(HW)
    r, c = pos // W, pos % W
    masks = []
    for ky in range(KSIZE):
        dy = ky - PAD
        for kx in range(KSIZE):
            dx = kx - PAD
            ok = (r + dy >= 0) & (r + dy < H) & (c + dx >= 0) & (c + dx < W)
            masks.append(ok.astype(jnp.float32))
    masks = jnp.stack(masks)                                      # (49, HW)
    w = w_conv.astype(jnp.float32).reshape(2, KSIZE * KSIZE)      # (2, 49)
    # (49, 2, HW): per-tap weight for both stat channels, boundary-masked.
    return w.T[:, :, None] * masks[:, None, :]


def _make_cbam_kernel(H, W, roll_like_numpy):
    """Fused CBAM kernel specialized for an HxW spatial map."""
    HW = H * W
    n_taps = KSIZE * KSIZE

    def kernel(x_ref, w1t_ref, w2_ref, wmask_ref, o_ref):
        # x_ref:     (NB, C, H*W)  input block (channels on sublanes, pixels on lanes)
        # w1t_ref:   (C, CR)       fc1 weight transposed       (CR = C // 16)
        # w2_ref:    (C, CR)       fc2 weight (natural layout)
        # wmask_ref: (49, 2, H*W)  conv weight * zero-pad boundary mask per tap
        # o_ref:     (NB, C, H*W)  out[b, c, p] = ca[b, c] + sa[b, p]
        x = x_ref[...].astype(jnp.float32)                        # (NB, C, HW)

        # ---- ChannelAttention: global avg/max pool -> shared MLP -> sigmoid
        pooled_avg = jnp.mean(x, axis=2, keepdims=True)           # (NB, C, 1)
        pooled_max = jnp.max(x, axis=2, keepdims=True)            # (NB, C, 1)
        w1t = w1t_ref[...][None, :, :]                            # (1, C, CR)
        w2 = w2_ref[...][None, :, :]                              # (1, C, CR)

        def shared_mlp(pooled):                                   # (NB, C, 1) -> (NB, C, 1)
            h = jnp.sum(pooled * w1t, axis=1, keepdims=True)      # fc1 -> (NB, 1, CR)
            h = jnp.where(h > 0, h, LEAKY_SLOPE * h)              # LeakyReLU
            return jnp.sum(h * w2, axis=2, keepdims=True)         # fc2 -> (NB, C, 1)

        ca = jax.nn.sigmoid(shared_mlp(pooled_avg) + shared_mlp(pooled_max))

        # ---- SpatialAttention: channel mean/max -> 7x7 conv via lane rolls
        avg_sp = jnp.mean(x, axis=1, keepdims=True)               # (NB, 1, HW)
        max_sp = jnp.max(x, axis=1, keepdims=True)                # (NB, 1, HW)
        feat = jnp.concatenate([avg_sp, max_sp], axis=1)          # (NB, 2, HW)

        # Each tap (dy, dx) = one lane roll by dy*W+dx (XLU) shared by BOTH
        # stat channels, times a precomputed weight*mask slab; 4 independent
        # accumulators for VALU ILP.  Channel sum deferred to a single reduce.
        accs = [jnp.zeros(feat.shape, jnp.float32) for _ in range(4)]
        for t in range(n_taps):
            ky, kx = divmod(t, KSIZE)
            shift = (ky - PAD) * W + (kx - PAD)                   # flat tap offset
            if shift == 0:
                shifted = feat
            else:
                amt = (-shift) % HW if roll_like_numpy else shift % HW
                shifted = pltpu.roll(feat, shift=amt, axis=2)
            accs[t % 4] = accs[t % 4] + wmask_ref[t] * shifted
        conv = (accs[0] + accs[1]) + (accs[2] + accs[3])          # (NB, 2, HW)
        sa = jax.nn.sigmoid(jnp.sum(conv, axis=1, keepdims=True)) # (NB, 1, HW)

        # ---- CBAMParallel: broadcast add, lane-dense store
        o_ref[...] = (ca + sa).astype(o_ref.dtype)                # (NB, C, HW)

    return kernel


def cbam_parallel(x, w_fc1, w_fc2, w_conv, *, batch_block=None):
    """CBAMParallel forward.

    x:      (N, C, H, W)
    w_fc1:  (C//16, C)   ChannelAttention.fc1 1x1-conv weight (squeezed)
    w_fc2:  (C, C//16)   ChannelAttention.fc2 1x1-conv weight (squeezed)
    w_conv: (1, 2, 7, 7) SpatialAttention.conv1 weight
    """
    N, C, H, W = x.shape
    CR = w_fc1.shape[0]
    if CR < 1:
        raise ValueError("in_planes must be >= 16 (fc1 reduces C -> C // 16).")
    assert w_fc1.shape == (CR, C) and w_fc2.shape == (C, CR)
    assert w_conv.shape == (1, 2, KSIZE, KSIZE)
    HW = H * W

    if batch_block is None:
        # Largest divisor of N whose in+out f32 working set fits a few MiB,
        # amortizing per-grid-step overhead for small images.
        budget = 8 * 1024 * 1024
        per_sample = 2 * C * HW * 4
        nb = max(1, min(N, budget // max(per_sample, 1)))
        while N % nb != 0:
            nb -= 1
        batch_block = nb
    assert N % batch_block == 0
    NB = batch_block

    x_flat = x.reshape(N, C, HW)                        # lane-dense layout (free reshape)
    w1t = jnp.asarray(w_fc1, jnp.float32).T             # (C, CR)
    w2 = jnp.asarray(w_fc2, jnp.float32)                # (C, CR)
    wmask = _conv_weight_mask_table(w_conv, H, W)       # (49, 2, HW)

    kernel = _make_cbam_kernel(H, W, _roll_matches_numpy())

    itemsize = jnp.dtype(x.dtype).itemsize
    cost = pl.CostEstimate(
        flops=int(N * (5 * C * HW + 2 * 2 * KSIZE * KSIZE * HW + 8 * C * CR)),
        transcendentals=int(N * (C + HW)),
        bytes_accessed=int(2 * N * C * HW * itemsize + wmask.size * 4),
    )

    out_flat = pl.pallas_call(
        kernel,
        out_shape=jax.ShapeDtypeStruct((N, C, HW), x.dtype),
        grid_spec=pltpu.PrefetchScalarGridSpec(
            num_scalar_prefetch=0,
            grid=(N // NB,),
            in_specs=[
                pl.BlockSpec((NB, C, HW), lambda n: (n, 0, 0)),
                # Constant-index blocks: DMA'd once, reused every grid step.
                pl.BlockSpec((C, CR), lambda n: (0, 0)),
                pl.BlockSpec((C, CR), lambda n: (0, 0)),
                pl.BlockSpec((KSIZE * KSIZE, 2, HW), lambda n: (0, 0, 0)),
            ],
            out_specs=pl.BlockSpec((NB, C, HW), lambda n: (n, 0, 0)),
        ),
        compiler_params=pltpu.CompilerParams(
            dimension_semantics=("parallel",),      # batch split across TCs (v7x)
            vmem_limit_bytes=32 * 1024 * 1024,      # explicit, v7x-safe budget
        ),
        cost_estimate=cost,
    )(x_flat, w1t, w2, wmask)

    return out_flat.reshape(N, C, H, W)


def cbam_parallel_ref(x, w_fc1, w_fc2, w_conv):
    """Pure-JAX reference mirroring PyTorch CBAMParallel.forward."""
    def shared_mlp(p):                                   # (N, C) -> (N, C)
        h = jnp.einsum("nc,rc->nr", p, w_fc1, precision=lax.Precision.HIGHEST)
        h = jnp.where(h > 0, h, LEAKY_SLOPE * h)
        return jnp.einsum("nr,cr->nc", h, w_fc2, precision=lax.Precision.HIGHEST)

    avg_p = jnp.mean(x, axis=(2, 3))
    max_p = jnp.max(x, axis=(2, 3))
    ca = jax.nn.sigmoid(shared_mlp(avg_p) + shared_mlp(max_p))[:, :, None, None]

    avg_s = jnp.mean(x, axis=1, keepdims=True)
    max_s = jnp.max(x, axis=1, keepdims=True)
    feat = jnp.concatenate([avg_s, max_s], axis=1)
    y = lax.conv_general_dilated(
        feat, w_conv, window_strides=(1, 1),
        padding=((PAD, PAD), (PAD, PAD)),
        dimension_numbers=("NCHW", "OIHW", "NCHW"),
        precision=lax.Precision.HIGHEST,
    )
    sa = jax.nn.sigmoid(y)
    return ca + sa


if __name__ == "__main__":
    key = jax.random.PRNGKey(0)
    kx, kc, k1, k2 = jax.random.split(key, 4)

    # ChannelAttention requires in_planes // 16 >= 1, so use C = 32.
    N, C, H, W = 2, 32, 16, 16
    CR = C // 16

    x = jax.random.normal(kx, (N, C, H, W), dtype=jnp.float32)
    w_conv = jax.random.normal(kc, (1, 2, KSIZE, KSIZE), dtype=jnp.float32) * 0.1
    w_fc1 = jax.random.normal(k1, (CR, C), dtype=jnp.float32) * 0.1
    w_fc2 = jax.random.normal(k2, (C, CR), dtype=jnp.float32) * 0.1

    out = jax.block_until_ready(cbam_parallel(x, w_fc1, w_fc2, w_conv))
    ref = jax.block_until_ready(cbam_parallel_ref(x, w_fc1, w_fc2, w_conv))

    assert out.shape == (N, C, H, W), out.shape
    max_err = float(jnp.max(jnp.abs(out - ref)))
    assert jnp.allclose(out, ref, atol=2e-5, rtol=2e-5), max_err

    print("KERNEL_OK")
</pallas_src>

<mosaic_0001>
module attributes {stable_mosaic.version = 11 : i64} {
  func.func @probe(%arg0: memref<8x128xf32, #tpu.memory_space<vmem>>, %arg1: memref<8x128xf32, #tpu.memory_space<vmem>>) attributes {dimension_semantics = [], scalar_prefetch = 0 : i64, scratch_operands = 0 : i64, tpu.core_type = #tpu.core_type<tc>} {
    %c0 = arith.constant 0 : index
    %c0_0 = arith.constant 0 : index
    %0 = vector.load %arg0[%c0, %c0_0] : memref<8x128xf32, #tpu.memory_space<vmem>>, vector<8x128xf32>
    %c1_i32 = arith.constant 1 : i32
    %1 = tpu.dynamic_rotate %0 by %c1_i32 dim 1 : vector<8x128xf32>, i32 -> vector<8x128xf32>
    %c0_1 = arith.constant 0 : index
    %c0_2 = arith.constant 0 : index
    %2 = vector.load %arg1[%c0_1, %c0_2] : memref<8x128xf32, #tpu.memory_space<vmem>>, vector<8x128xf32>
    tpu.vector_store %arg1[%c0_1, %c0_2], %1 {strides = array<i32>} : memref<8x128xf32, #tpu.memory_space<vmem>>, vector<8x128xf32>,
    return
  }
}

</mosaic_0001>

<bundles_post_ra>
// kernel: tpu_custom_call.1
= control target key start
LH: loop header
LB: loop body
LE: loop exit
PB: predicated region body
PF: predicated region fallthrough
CT: control target
= control target key end

     0   :  { %6 = vsyncpa [#allocation3], 0  ;;  %s128_s0 = inlined_call_operand.hbm [shape: f32[8,128], index: 0, kind: input, shape index: {}]   ;;  %s129_s1 = inlined_call_operand.hbm [shape: f32[8,128], index: 1, kind: output, shape index: {}]  }
   0x1   :  { %7 = vsyncpa [#allocation4], 0  ;;  %s91_s6 = smov [#allocation2]   ;;  %s43_s10 = scalar_lea.hbm %s128_s0, 128 }
   0x2   :  { %s14_s7 = sshll.u32 %s91_s6, 4  ;;  %p44_p0 = scmp.ne.s32.totalorder %s128_s0, %s43_s10  ;;  %s15_s7 = int_to_ptr.vmem [resolvable:$true] %s14_s7 }
   0x3   :  { %p47_p1 = scmp.lt.u32.totalorder %s43_s10, %s128_s0 }
   0x5   :  { %p49_p2 = pnand %p47_p1, %p44_p0 }
   0x7   :  { %52 = shalt.err (!%p49_p2)
}
   0x8   :  { %s53_s15 = scalar_lea.vmem %s15_s7, 128  ;;  %p58_p4 = scmp.lt.s32.totalorder %s15_s7, %s15_s7 }
   0x9   :  { %p54_p3 = scmp.ne.s32.totalorder %s15_s7, %s53_s15  ;;  %p59_p5 = scmp.lt.s32.totalorder %s53_s15, %s53_s15 }
   0xb   :  { %p60_p6 = por %p59_p5, %p58_p4 }
   0xd   :  { %p61_p7 = pnand %p60_p6, %p54_p3 }
   0xf   :  { %64 = shalt.err (!%p61_p7)
}
  0x10   :  { %17 = dma.hbm_to_vmem [thread:$0]  %s128_s0, 128, %s15_s7, [#allocation3]  }
  0x11   :  { %87 = dma.done.wait [#allocation3], 128  }
  0x12   :  { %88 = vsyncadd [#allocation3], 4294967168  ;;  %v21_v0 = vld [vmem:[#allocation2] sm:$0xff]  ;;  %s92_s18 = smov 1   ;;  %s93_s19 = smov [#allocation5]  }
  0x13   :  { %22 = vrot.lane.b32.xlu0 %v21_v0, %s92_s18  ;;  %s31_s20 = sshll.u32 %s93_s19, 4  ;;  %s32_s20 = int_to_ptr.vmem [resolvable:$true] %s31_s20 }
  0x14   :  { %s65_s21 = scalar_lea.vmem %s32_s20, 128  ;;  %p70_p9 = scmp.lt.s32.totalorder %s32_s20, %s32_s20 }
  0x15   :  { %p66_p8 = scmp.ne.s32.totalorder %s32_s20, %s65_s21  ;;  %p71_p10 = scmp.lt.s32.totalorder %s65_s21, %s65_s21 }
  0x17   :  { %p72_p11 = por %p71_p10, %p70_p9 }
  0x19   :  { %p73_p12 = pnand %p72_p11, %p66_p8 }
  0x85   :  { %v23_v1 = vpop.permute.xlu0 %22 }
  0x86   :  { %24 = vst [vmem:[#allocation5] sm:$0xff] %v23_v1 }
  0x87   :  { %76 = shalt.err (!%p73_p12)
}
  0x88   :  { %s77_s0 = scalar_lea.hbm %s129_s1, 128 }
  0x89   :  { %p78_p13 = scmp.ne.s32.totalorder %s129_s1, %s77_s0  ;;  %p81_p0 = scmp.lt.u32.totalorder %s77_s0, %s129_s1 }
  0x8b   :  { %p83_p1 = pnand %p81_p0, %p78_p13 }
  0x8d   :  { %86 = shalt.err (!%p83_p1)
}
  0x8e   :  { %34 = dma.vmem_to_hbm [thread:$0]  %s32_s20, 128, %s129_s1, [#allocation4]  }
  0x8f   :  { %89 = dma.done.wait [#allocation4], 128  }
  0x90   :  { %90 = vsyncadd [#allocation4], 4294967168 }
  0x91   :  { %38 = vsyncpa [#allocation3], 1 }
  0x92   :  { %39 = vsyncpa [#allocation4], 1 }

</bundles_post_ra>
